<compile_context>
chip_gen: v7x
topology: tpu7x:2x2x1
jax: 0.10.0
libtpu: 0.0.40
codegen_flags: <defaults>
</compile_context>

<pallas_src>
import math
from functools import partial

import jax
import jax.numpy as jnp
from jax.experimental import pallas as pl
from jax.experimental.pallas import tpu as pltpu


def _additive_attention_kernel(k_ref, q_ref, v_ref, wk_ref, wq_ref, bq_ref,
                               out_ref, patt_ref, *, compute_dtype):
    # Per grid step: TB batch elements.
    TB, S, Dk = k_ref.shape
    Dv = v_ref.shape[-1]

    wk = wk_ref[...].astype(compute_dtype)      # (Dk, Dv), transposed in wrapper
    wq = wq_ref[...].astype(compute_dtype)      # (Dk, Dv)
    bq = bq_ref[...]                            # (1, Dv), f32

    # Flatten (TB, S, Dk) -> (TB*S, Dk) so one matmul covers all TB batches.
    k2 = k_ref[...].reshape(TB * S, Dk).astype(compute_dtype)
    q2 = q_ref[...].reshape(TB * S, Dk).astype(compute_dtype)

    # fck(k) = sigmoid(k @ Wk^T) ; fcq(q) = sigmoid(q @ Wq^T + bq)
    kk = jax.nn.sigmoid(
        jnp.dot(k2, wk, preferred_element_type=jnp.float32))            # (TB*S, Dv)
    qq = jax.nn.sigmoid(
        jnp.dot(q2, wq, preferred_element_type=jnp.float32) + bq)       # (TB*S, Dv)

    kk3 = kk.reshape(TB, S, Dv)
    qq3 = qq.reshape(TB, S, Dv)

    # self_energy = sigmoid(kk @ qq^T) / sqrt(Dk); energy = mean over the
    # zeroed-diagonal rows = (row_sum - diag) / (sqrt(Dk) * S).
    e = jnp.einsum('bsd,btd->bst',
                   kk3.astype(compute_dtype), qq3.astype(compute_dtype),
                   preferred_element_type=jnp.float32)                  # (TB, S, S)
    se = jax.nn.sigmoid(e)
    row_sum = jnp.sum(se, axis=-1)                                      # (TB, S)
    diag = jax.nn.sigmoid(jnp.sum(kk3 * qq3, axis=-1))                  # (TB, S)
    inv_scale = jnp.float32(1.0 / (math.sqrt(Dk) * S))
    energy = (row_sum - diag) * inv_scale                               # (TB, S)

    # Softmax over the sequence dim (lane axis) — lane-dense layout.
    m = jnp.max(energy, axis=-1, keepdims=True)
    ex = jnp.exp(energy - m)
    p = ex / jnp.sum(ex, axis=-1, keepdims=True)                        # (TB, S)

    # Pooled output via MXU batched matmul: (TB, 1, S) @ (TB, S, Dv).
    v3 = v_ref[...].astype(compute_dtype)
    pooled = jnp.einsum('bqs,bsv->bqv',
                        p.reshape(TB, 1, S).astype(compute_dtype), v3,
                        preferred_element_type=jnp.float32)             # (TB, 1, Dv)

    out_ref[0] = pooled.reshape(TB, Dv).astype(out_ref.dtype)           # (TB, Dv)
    patt_ref[0] = p.astype(patt_ref.dtype)                              # (TB, S)


def _largest_divisor_le(n, cap):
    cap = max(1, min(cap, n))
    for d in range(cap, 0, -1):
        if n % d == 0:
            return d
    return 1


def additive_attention(k, q, v, wk, wq, bq, *, tb_max=16,
                       compute_dtype=jnp.float32):
    """k, q: (B, S, Dk); v: (B, S, Dv); wk, wq: (Dv, Dk) torch-style; bq: (Dv,)."""
    B, S, Dk = k.shape
    Dv = v.shape[-1]

    # Pick TB: batch elements per grid step. Keep the grid length >= 2 when
    # possible so v7x can shard the parallel axis across both TensorCores.
    tb_cap = 1 if B == 1 else min(tb_max, max(1, B // 2))
    TB = _largest_divisor_le(B, tb_cap)
    nb = B // TB

    wk_t = wk.T.astype(jnp.float32)              # (Dk, Dv)
    wq_t = wq.T.astype(jnp.float32)              # (Dk, Dv)
    bq_2d = bq.reshape(1, Dv).astype(jnp.float32)

    kernel = partial(_additive_attention_kernel, compute_dtype=compute_dtype)

    grid_spec = pltpu.PrefetchScalarGridSpec(
        num_scalar_prefetch=0,
        grid=(nb,),
        in_specs=[
            pl.BlockSpec((TB, S, Dk), lambda b: (b, 0, 0)),   # k
            pl.BlockSpec((TB, S, Dk), lambda b: (b, 0, 0)),   # q
            pl.BlockSpec((TB, S, Dv), lambda b: (b, 0, 0)),   # v
            pl.BlockSpec((Dk, Dv), lambda b: (0, 0)),         # Wk^T (constant)
            pl.BlockSpec((Dk, Dv), lambda b: (0, 0)),         # Wq^T (constant)
            pl.BlockSpec((1, Dv), lambda b: (0, 0)),          # bq   (constant)
        ],
        out_specs=[
            pl.BlockSpec((1, TB, Dv), lambda b: (b, 0, 0)),   # pooled (sublane/lane dense)
            pl.BlockSpec((1, TB, S), lambda b: (b, 0, 0)),    # p_atten, S on lanes
        ],
    )

    out, p_atten = pl.pallas_call(
        kernel,
        out_shape=(
            jax.ShapeDtypeStruct((nb, TB, Dv), jnp.float32),
            jax.ShapeDtypeStruct((nb, TB, S), jnp.float32),
        ),
        grid_spec=grid_spec,
        compiler_params=pltpu.CompilerParams(
            dimension_semantics=("parallel",)),
    )(k, q, v, wk_t, wq_t, bq_2d)

    # Restore the module's output shapes: (B, Dv) and (B, S, 1).
    return out.reshape(B, Dv), p_atten.reshape(B, S, 1)


def _reference(k, q, v, wk, wq, bq):
    """Pure-JAX reproduction of the PyTorch forward (mask=None)."""
    kk = jax.nn.sigmoid(jnp.einsum('bsd,vd->bsv', k, wk))
    qq = jax.nn.sigmoid(jnp.einsum('bsd,vd->bsv', q, wq) + bq)
    e = jax.nn.sigmoid(jnp.einsum('bsv,btv->bst', kk, qq))
    e = e / (q.shape[-1] ** 0.5)
    offdiag = 1.0 - jnp.eye(k.shape[1])[None]
    energy = jnp.mean(offdiag * e, axis=-1, keepdims=True)
    p = jax.nn.softmax(energy, axis=1)
    return jnp.sum(p * v, axis=1), p


if __name__ == "__main__":
    B, S, K_DIM, V_DIM = 8, 8, 16, 32

    key = jax.random.PRNGKey(0)
    kk_, kq_, kv_, kwk, kwq, kbq = jax.random.split(key, 6)

    k = jax.random.normal(kk_, (B, S, K_DIM), dtype=jnp.float32)
    q = jax.random.normal(kq_, (B, S, K_DIM), dtype=jnp.float32)
    v = jax.random.normal(kv_, (B, S, V_DIM), dtype=jnp.float32)

    # Deterministic parameter init (torch.nn.Linear-style uniform bounds).
    bound = 1.0 / math.sqrt(K_DIM)
    wk = jax.random.uniform(kwk, (V_DIM, K_DIM), jnp.float32, -bound, bound)
    wq = jax.random.uniform(kwq, (V_DIM, K_DIM), jnp.float32, -bound, bound)
    bq = jax.random.uniform(kbq, (V_DIM,), jnp.float32, -bound, bound)

    out, p_atten = additive_attention(k, q, v, wk, wq, bq)
    out = jax.block_until_ready(out)
    p_atten = jax.block_until_ready(p_atten)

    ref_out, ref_p = _reference(k, q, v, wk, wq, bq)
    assert out.shape == (B, V_DIM) and p_atten.shape == (B, S, 1)
    assert jnp.allclose(out, ref_out, atol=1e-5, rtol=1e-5)
    assert jnp.allclose(p_atten, ref_p, atol=1e-5, rtol=1e-5)

    print("KERNEL_OK")
</pallas_src>

<mosaic_0001>
module attributes {stable_mosaic.version = 11 : i64} {
  func.func @_additive_attention_kernel(%arg0: i32, %arg1: memref<4x8x16xf32, #tpu.memory_space<vmem>>, %arg2: memref<4x8x16xf32, #tpu.memory_space<vmem>>, %arg3: memref<4x8x32xf32, #tpu.memory_space<vmem>>, %arg4: memref<16x32xf32, #tpu.memory_space<vmem>>, %arg5: memref<16x32xf32, #tpu.memory_space<vmem>>, %arg6: memref<1x32xf32, #tpu.memory_space<vmem>>, %arg7: memref<1x4x32xf32, #tpu.memory_space<vmem>>, %arg8: memref<1x4x8xf32, #tpu.memory_space<vmem>>) attributes {dimension_semantics = [#tpu.dimension_semantics<parallel>], iteration_bounds = array<i64: 2>, scalar_prefetch = 0 : i64, scratch_operands = 0 : i64, tpu.core_type = #tpu.core_type<tc>, window_params = [{transform_indices = @transform_0, window_bounds = array<i64: 4, 8, 16>}, {transform_indices = @transform_1, window_bounds = array<i64: 4, 8, 16>}, {transform_indices = @transform_2, window_bounds = array<i64: 4, 8, 32>}, {pipeline_mode = #tpu.pipeline_mode<synchronous>, transform_indices = @transform_3, window_bounds = array<i64: 16, 32>}, {pipeline_mode = #tpu.pipeline_mode<synchronous>, transform_indices = @transform_4, window_bounds = array<i64: 16, 32>}, {pipeline_mode = #tpu.pipeline_mode<synchronous>, transform_indices = @transform_5, window_bounds = array<i64: 1, 32>}, {transform_indices = @transform_6, window_bounds = array<i64: 1, 4, 32>}, {transform_indices = @transform_7, window_bounds = array<i64: 1, 4, 8>}]} {
    %c0 = arith.constant 0 : index
    %c0_0 = arith.constant 0 : index
    %0 = vector.load %arg4[%c0, %c0_0] : memref<16x32xf32, #tpu.memory_space<vmem>>, vector<16x32xf32>
    %c0_1 = arith.constant 0 : index
    %c0_2 = arith.constant 0 : index
    %1 = vector.load %arg5[%c0_1, %c0_2] : memref<16x32xf32, #tpu.memory_space<vmem>>, vector<16x32xf32>
    %c0_3 = arith.constant 0 : index
    %c0_4 = arith.constant 0 : index
    %2 = vector.load %arg6[%c0_3, %c0_4] : memref<1x32xf32, #tpu.memory_space<vmem>>, vector<1x32xf32>
    %c0_5 = arith.constant 0 : index
    %c0_6 = arith.constant 0 : index
    %c0_7 = arith.constant 0 : index
    %3 = vector.load %arg1[%c0_5, %c0_6, %c0_7] : memref<4x8x16xf32, #tpu.memory_space<vmem>>, vector<4x8x16xf32>
    %4 = vector.shape_cast %3 : vector<4x8x16xf32> to vector<32x16xf32>
    %c0_8 = arith.constant 0 : index
    %c0_9 = arith.constant 0 : index
    %c0_10 = arith.constant 0 : index
    %5 = vector.load %arg2[%c0_8, %c0_9, %c0_10] : memref<4x8x16xf32, #tpu.memory_space<vmem>>, vector<4x8x16xf32>
    %6 = vector.shape_cast %5 : vector<4x8x16xf32> to vector<32x16xf32>
    %cst = arith.constant dense<0.000000e+00> : vector<32x32xf32>
    %7 = tpu.matmul %4, %0, %cst {dimension_numbers = #tpu.dot_dimension_numbers<[1], [0], [0], [1], [0, 0, 1, 1], [], []>} : vector<32x16xf32>, vector<16x32xf32>, vector<32x32xf32> -> vector<32x32xf32>
    %8 = arith.negf %7 : vector<32x32xf32>
    %9 = math.exp %8 : vector<32x32xf32>
    %cst_11 = arith.constant 1.000000e+00 : f32
    %10 = vector.broadcast %cst_11 : f32 to vector<32x32xf32>
    %11 = arith.addf %10, %9 : vector<32x32xf32>
    %12 = arith.divf %10, %11 : vector<32x32xf32>
    %cst_12 = arith.constant dense<0.000000e+00> : vector<32x32xf32>
    %13 = tpu.matmul %6, %1, %cst_12 {dimension_numbers = #tpu.dot_dimension_numbers<[1], [0], [0], [1], [0, 0, 1, 1], [], []>} : vector<32x16xf32>, vector<16x32xf32>, vector<32x32xf32> -> vector<32x32xf32>
    %14 = vector.broadcast %2 : vector<1x32xf32> to vector<32x32xf32>
    %15 = arith.addf %13, %14 : vector<32x32xf32>
    %16 = arith.negf %15 : vector<32x32xf32>
    %17 = math.exp %16 : vector<32x32xf32>
    %cst_13 = arith.constant 1.000000e+00 : f32
    %18 = vector.broadcast %cst_13 : f32 to vector<32x32xf32>
    %19 = arith.addf %18, %17 : vector<32x32xf32>
    %20 = arith.divf %18, %19 : vector<32x32xf32>
    %21 = vector.shape_cast %12 : vector<32x32xf32> to vector<4x8x32xf32>
    %22 = vector.shape_cast %20 : vector<32x32xf32> to vector<4x8x32xf32>
    "tpu.trace_start"() <{level = 10 : i32, message = "bsd,btd->bst"}> : () -> ()
    %cst_14 = arith.constant dense<0.000000e+00> : vector<4x8x8xf32>
    %23 = tpu.matmul %21, %22, %cst_14 {dimension_numbers = #tpu.dot_dimension_numbers<[2], [2], [1], [1], [0, 0, 0, 1, 1, 1], [0], [0]>} : vector<4x8x32xf32>, vector<4x8x32xf32>, vector<4x8x8xf32> -> vector<4x8x8xf32>
    "tpu.trace_stop"() : () -> ()
    %24 = arith.negf %23 : vector<4x8x8xf32>
    %25 = math.exp %24 : vector<4x8x8xf32>
    %cst_15 = arith.constant 1.000000e+00 : f32
    %26 = vector.broadcast %cst_15 : f32 to vector<4x8x8xf32>
    %27 = arith.addf %26, %25 : vector<4x8x8xf32>
    %28 = arith.divf %26, %27 : vector<4x8x8xf32>
    %cst_16 = arith.constant dense<0.000000e+00> : vector<4x8xf32>
    %29 = vector.multi_reduction <add>, %28, %cst_16 [2] : vector<4x8x8xf32> to vector<4x8xf32>
    %30 = arith.mulf %21, %22 : vector<4x8x32xf32>
    %cst_17 = arith.constant dense<0.000000e+00> : vector<4x8xf32>
    %31 = vector.multi_reduction <add>, %30, %cst_17 [2] : vector<4x8x32xf32> to vector<4x8xf32>
    %32 = arith.negf %31 : vector<4x8xf32>
    %33 = math.exp %32 : vector<4x8xf32>
    %cst_18 = arith.constant 1.000000e+00 : f32
    %34 = vector.broadcast %cst_18 : f32 to vector<4x8xf32>
    %35 = arith.addf %34, %33 : vector<4x8xf32>
    %36 = arith.divf %34, %35 : vector<4x8xf32>
    %37 = arith.subf %29, %36 : vector<4x8xf32>
    %cst_19 = arith.constant 3.125000e-02 : f32
    %38 = vector.broadcast %cst_19 : f32 to vector<4x8xf32>
    %39 = arith.mulf %37, %38 : vector<4x8xf32>
    %cst_20 = arith.constant dense<0xFF800000> : vector<4xf32>
    %40 = vector.multi_reduction <maximumf>, %39, %cst_20 [1] : vector<4x8xf32> to vector<4xf32>
    %41 = vector.shape_cast %40 : vector<4xf32> to vector<4x1xf32>
    %42 = vector.broadcast %41 : vector<4x1xf32> to vector<4x8xf32>
    %43 = arith.subf %39, %42 : vector<4x8xf32>
    %44 = math.exp %43 : vector<4x8xf32>
    %cst_21 = arith.constant dense<0.000000e+00> : vector<4xf32>
    %45 = vector.multi_reduction <add>, %44, %cst_21 [1] : vector<4x8xf32> to vector<4xf32>
    %46 = vector.shape_cast %45 : vector<4xf32> to vector<4x1xf32>
    %47 = vector.broadcast %46 : vector<4x1xf32> to vector<4x8xf32>
    %48 = arith.divf %44, %47 : vector<4x8xf32>
    %c0_22 = arith.constant 0 : index
    %c0_23 = arith.constant 0 : index
    %c0_24 = arith.constant 0 : index
    %49 = vector.load %arg3[%c0_22, %c0_23, %c0_24] : memref<4x8x32xf32, #tpu.memory_space<vmem>>, vector<4x8x32xf32>
    %50 = vector.shape_cast %48 : vector<4x8xf32> to vector<4x1x8xf32>
    "tpu.trace_start"() <{level = 10 : i32, message = "bqs,bsv->bqv"}> : () -> ()
    %cst_25 = arith.constant dense<0.000000e+00> : vector<4x1x32xf32>
    %51 = tpu.matmul %50, %49, %cst_25 {dimension_numbers = #tpu.dot_dimension_numbers<[2], [1], [1], [2], [0, 0, 0, 1, 1, 2], [0], [0]>} : vector<4x1x8xf32>, vector<4x8x32xf32>, vector<4x1x32xf32> -> vector<4x1x32xf32>
    "tpu.trace_stop"() : () -> ()
    %52 = vector.shape_cast %51 : vector<4x1x32xf32> to vector<4x32xf32>
    %c0_26 = arith.constant 0 : index
    %c0_27 = arith.constant 0 : index
    %c0_28 = arith.constant 0 : index
    %53 = vector.load %arg7[%c0_26, %c0_27, %c0_28] : memref<1x4x32xf32, #tpu.memory_space<vmem>>, vector<1x4x32xf32>
    %54 = vector.shape_cast %53 : vector<1x4x32xf32> to vector<4x32xf32>
    %55 = vector.shape_cast %52 : vector<4x32xf32> to vector<1x4x32xf32>
    tpu.vector_store %arg7[%c0_26, %c0_27, %c0_28], %55 {strides = array<i32>} : memref<1x4x32xf32, #tpu.memory_space<vmem>>, vector<1x4x32xf32>,
    %c0_29 = arith.constant 0 : index
    %c0_30 = arith.constant 0 : index
    %c0_31 = arith.constant 0 : index
    %56 = vector.load %arg8[%c0_29, %c0_30, %c0_31] : memref<1x4x8xf32, #tpu.memory_space<vmem>>, vector<1x4x8xf32>
    %57 = vector.shape_cast %56 : vector<1x4x8xf32> to vector<4x8xf32>
    %58 = vector.shape_cast %48 : vector<4x8xf32> to vector<1x4x8xf32>
    tpu.vector_store %arg8[%c0_29, %c0_30, %c0_31], %58 {strides = array<i32>} : memref<1x4x8xf32, #tpu.memory_space<vmem>>, vector<1x4x8xf32>,
    return
  }
  func.func @transform_0(%arg0: i32) -> (i32, i32, i32) {
    %c0_i32 = arith.constant 0 : i32
    %c0_i32_0 = arith.constant 0 : i32
    %c0_i32_1 = arith.constant 0 : i32
    return %arg0, %c0_i32, %c0_i32_0 : i32, i32, i32
  }
  func.func @transform_1(%arg0: i32) -> (i32, i32, i32) {
    %c0_i32 = arith.constant 0 : i32
    %c0_i32_0 = arith.constant 0 : i32
    %c0_i32_1 = arith.constant 0 : i32
    return %arg0, %c0_i32, %c0_i32_0 : i32, i32, i32
  }
  func.func @transform_2(%arg0: i32) -> (i32, i32, i32) {
    %c0_i32 = arith.constant 0 : i32
    %c0_i32_0 = arith.constant 0 : i32
    %c0_i32_1 = arith.constant 0 : i32
    return %arg0, %c0_i32, %c0_i32_0 : i32, i32, i32
  }
  func.func @transform_3(%arg0: i32) -> (i32, i32) {
    %c0_i32 = arith.constant 0 : i32
    %c0_i32_0 = arith.constant 0 : i32
    %c0_i32_1 = arith.constant 0 : i32
    return %c0_i32, %c0_i32_0 : i32, i32
  }
  func.func @transform_4(%arg0: i32) -> (i32, i32) {
    %c0_i32 = arith.constant 0 : i32
    %c0_i32_0 = arith.constant 0 : i32
    %c0_i32_1 = arith.constant 0 : i32
    return %c0_i32, %c0_i32_0 : i32, i32
  }
  func.func @transform_5(%arg0: i32) -> (i32, i32) {
    %c0_i32 = arith.constant 0 : i32
    %c0_i32_0 = arith.constant 0 : i32
    %c0_i32_1 = arith.constant 0 : i32
    return %c0_i32, %c0_i32_0 : i32, i32
  }
  func.func @transform_6(%arg0: i32) -> (i32, i32, i32) {
    %c0_i32 = arith.constant 0 : i32
    %c0_i32_0 = arith.constant 0 : i32
    %c0_i32_1 = arith.constant 0 : i32
    return %arg0, %c0_i32, %c0_i32_0 : i32, i32, i32
  }
  func.func @transform_7(%arg0: i32) -> (i32, i32, i32) {
    %c0_i32 = arith.constant 0 : i32
    %c0_i32_0 = arith.constant 0 : i32
    %c0_i32_1 = arith.constant 0 : i32
    return %arg0, %c0_i32, %c0_i32_0 : i32, i32, i32
  }
}

</mosaic_0001>

<bundles_post_ra>
// kernel: tpu_custom_call.1
= control target key start
LH: loop header
LB: loop body
LE: loop exit
PB: predicated region body
PF: predicated region fallthrough
CT: control target
= control target key end

     0   :  { %s2836_s0 = inlined_call_operand.hbm [shape: f32[8,8,16], index: 0, kind: input, shape index: {}]   ;;  %s2837_s1 = inlined_call_operand.hbm [shape: f32[8,8,16], index: 1, kind: input, shape index: {}]   ;;  %s2838_s2 = inlined_call_operand.hbm [shape: f32[8,8,32], index: 2, kind: input, shape index: {}]   ;;  %s2839_s3 = inlined_call_operand.hbm [shape: f32[16,32], index: 3, kind: input, shape index: {}]   ;;  %s2840_s4 = inlined_call_operand.hbm [shape: f32[16,32], index: 4, kind: input, shape index: {}]   ;;  %s2841_s5 = inlined_call_operand.vmem [shape: f32[1,32], index: 5, kind: input, shape index: {}]   ;;  %s2842_s6 = inlined_call_operand.hbm [shape: f32[2,4,32], index: 6, kind: output, shape index: {0}]   ;;  %s2843_s7 = inlined_call_operand.hbm [shape: f32[2,4,8], index: 7, kind: output, shape index: {1}]  }
   0x1   :  { %2865 = sst [smem:[#allocation24_spill]] %s2837_s1 }
   0x2   :  { %2866 = sst [smem:[#allocation25_spill]] %s2839_s3 }
   0x3   :  { %13 = vsyncpa [#allocation3], 0 }
   0x4   :  { %15 = vsyncpa [#allocation3 + $0x1], 0 }
   0x5   :  { %16 = vsyncpa [#allocation6], 0 }
   0x6   :  { %18 = vsyncpa [#allocation6 + $0x1], 0 }
   0x7   :  { %19 = vsyncpa [#allocation9], 0 }
   0x8   :  { %20 = vsyncpa [#allocation4], 0 }
   0x9   :  { %22 = vsyncpa [#allocation4 + $0x1], 0 }
   0xa   :  { %23 = vsyncpa [#allocation13], 0 }
   0xb   :  { %25 = vsyncpa [#allocation13 + $0x1], 0  ;;  %s2380_s24 = smov 0   ;;  %s2382_s25 = smov 0  }
   0xc   :  { %s2384_s26 = smov 0   ;;  %s2386_s27 = smov 0  }
   0xd LB: > { %2867 = sst [smem:[#allocation19_spill]] %s2314_s24  ;;  %s2401_s28 = sadd.s32 4294967295, %s2326_s27   ;;  %s2326_s27 = sphi %s2386_s27, %s2902_s27   ;;  %s2322_s26 = sphi %s2384_s26, %s2906_s26   ;;  %s2318_s25 = sphi %s2382_s25, %s2905_s25   ;;  %s2314_s24 = sphi %s2380_s24, %s2904_s24  }
   0xe   : > { %2868 = sst [smem:[#allocation20_spill]] %s2326_s27  ;;  %s1741_s29 = sadd.s32 4294967294, %s2326_s27  }
   0xf   : > { %s2405_s30 = sadd.s32 1, %s2326_s27   ;;  %s38_s8 = sadd.s32 1, %s2322_s26 }
  0x10   : > { %2869 = sst [smem:[#allocation21_spill]] %s2405_s30  ;;  %s35_s9 = ssub.s32 %s2326_s27, %s2405_s30 }
  0x11   : > { %p45_p0 = scmp.ne.s32.totalorder %s2322_s26, %s2318_s25  ;;  %p36_p1 = scmp.eq.s32.totalorder %s35_s9, 0 }
  0x12   : > { %p46_p2 = scmp.eq.s32.totalorder %s2326_s27, 0  ;;  %p51_p3 = scmp.ne.s32.totalorder %s2318_s25, %s2314_s24 }
  0x13   : > { %p2845_p4 = scmp.eq.s32.totalorder %s2401_s28, 0  ;;  %p190_p7 = scmp.eq.s32.totalorder %s2401_s28, 1 }
  0x14   : > { %s2417_s10 = scalar_select %p36_p1, %s2322_s26, %s38_s8  }
  0x15   : > { %p2419_p5 = por %p46_p2, %p45_p0  ;;  %p2425_p6 = por %p2845_p4, %p51_p3 }
  0x16   : > { %2870 = sst [smem:[#allocation22_spill]] %s2417_s10  ;;  %p196_p8 = scmp.eq.s32.totalorder %s1741_s29, 1 }
  0x17   : > { %s2871_s11 = scalar_select %p2419_p5, 1, 0 }
  0x18   : > { %s2872_s12 = scalar_select %p2425_p6, 1, 0 }
  0x19   : > { %p1742_p9 = scmp.ge.s32.totalorder %s2326_s27, 1  ;;  %p229_p10 = scmp.lt.s32.totalorder %s2326_s27, 3 }
  0x1a   : > { %p2432_p11 = por %p190_p7, %p45_p0  ;;  %p2436_p12 = por %p196_p8, %p51_p3 }
  0x1b   : > { %p2440_p13 = pnand %p1742_p9, %p229_p10  ;;  %s2328_s16 = smov [#allocation8]  }
  0x1c   : > { %s2873_s13 = scalar_select %p2432_p11, 1, 0 }
  0x1d   : > { %s2874_s14 = scalar_select %p2436_p12, 1, 0 }
  0x1e   : > { %s2876_s15 = scalar_select %p2440_p13, 1, 0 }
  0x1f   : > { %2875 = sst [smem:[#allocation23_spill]] %s2874_s14  ;;  %p1923_p1 = pneg %p2440_p13 }
  0x20   : > { %s241_s17 = sshll.u32 %s2328_s16, 4  ;;  %s2844_s19 = sand.u32 1, %s2322_s26   ;;  %s242_s17 = int_to_ptr.vmem [resolvable:$true] %s241_s17 }
  0x21   : > { %p2448_p2 = pnand %p1923_p1, %p2845_p4  ;;  %s2457_s20 = sshll.u32 %s2844_s19, 5 }
  0x22   : > { %s2878_s3 = sld [smem:[#allocation25_spill]] }
  0x23   : > { %s2877_s18 = scalar_select %p2448_p2, 1, 0 }
  0x24   : > { %p2855_p8 = pneg %p2448_p2 }
  0x28   : > { %s2074_s23 = scalar_lea.hbm %s2878_s3, 256 }
  0x29   : > { %p2075_p7 = scmp.ne.s32.totalorder %s2878_s3, %s2074_s23  ;;  %p2081_p1 = scmp.lt.u32.totalorder %s2074_s23, %s2878_s3 }
  0x2b   : > { %p2077_p9 = pnand %p2855_p8, %p2075_p7 }
  0x2d   : > { %p2078_p10 = pneg %p2077_p9 }
  0x2f   : > { %p2083_p0 = pnand %p2081_p1, %p2078_p10 }
  0x31   : > { %2086 = shalt.err (!%p2083_p0)
}
  0x32   : > { %s2087_s19 = scalar_lea.vmem %s242_s17, 256  ;;  %p2095_p11 = scmp.lt.s32.totalorder %s242_s17, %s242_s17 }
  0x33   : > { %p2088_p4 = scmp.ne.s32.totalorder %s242_s17, %s2087_s19  ;;  %p2096_p6 = scmp.lt.s32.totalorder %s2087_s19, %s2087_s19 }
  0x35   : > { %p2090_p3 = pnand %p2088_p4, %p2855_p8  ;;  %p2097_p13 = por %p2096_p6, %p2095_p11 }
  0x37   : > { %p2091_p12 = pneg %p2090_p3 }
  0x39   : > { %p2098_p5 = pnand %p2097_p13, %p2091_p12 }
  0x3b   : > { %2101 = shalt.err (!%p2098_p5)
}
  0x3c   : > { %s2851_s21 = smov 128   ;;  %s2853_s22 = smov 8  }
  0x3d   : > { %1926 = dma.hbm_to_vmem [thread:$0]  (!%p2448_p2), %s2878_s3, 256, %s242_s17, [#allocation9], %s2851_s21, %s2851_s21, %s2853_s22  }
  0x3e   : > { %s2485_s19 = sshll.u32 %s2326_s27, 9  ;;  %p2879_p4 = scmp.ne.s32.totalorder %s2871_s11, 0 }
  0x3f   : > { %p2880_p5 = scmp.lt.s32.totalorder %s2326_s27, 2  ;;  %s292_s9 = sand.u32 1, %s2326_s27  }
  0x40   : > { %s2882_s1 = sld [smem:[#allocation24_spill]]  ;;  %s296_s17 = scalar_lea.vmem [#allocation5], %s2457_s20 }
  0x41   : > { %p2491_p6 = pnand %p2880_p5, %p2879_p4  ;;  %s303_s23 = sshll.u32 %s296_s17, 4  ;;  %s2503_s23 = int_to_ptr.vmem [resolvable:$true] %s303_s23 }
  0x42   : > { %s2505_s11 = scalar_lea.sflag [#allocation6], %s292_s9 }
  0x43   : > { %s2881_s8 = scalar_select %p2491_p6, 1, 0 }
  0x44   : > { %p2511_p12 = pneg %p2491_p6 }
  0x46   : > { %s2500_s30 = scalar_lea.hbm %s2882_s1, %s2485_s19  ;;  %s2107_s22 = scalar_lea.hbm %s2882_s1, 1024 }
  0x47   : > { %s2102_s29 = scalar_lea.hbm %s2500_s30, 512  ;;  %p2108_p3 = scmp.lt.u32.totalorder %s2500_s30, %s2882_s1 }
  0x48   : > { %p2103_p11 = scmp.ne.s32.totalorder %s2500_s30, %s2102_s29  ;;  %p2109_p7 = scmp.lt.u32.totalorder %s2107_s22, %s2102_s29 }
  0x49   : > { %s2883_s21 = scalar_select %p2511_p12, 1, 0 }
  0x4a   : > { %p2105_p13 = pnand %p2511_p12, %p2103_p11  ;;  %p2110_p9 = por %p2109_p7, %p2108_p3 }
  0x4b   : > { %p2111_p10 = scmp.lt.u32.totalorder %s2102_s29, %s2500_s30 }
  0x4c   : > { %p2106_p0 = pneg %p2105_p13 }
  0x4d   : > { %p2112_p1 = por %p2111_p10, %p2110_p9 }
  0x4f   : > { %p2113_p4 = pnand %p2112_p1, %p2106_p0 }
  0x51   : > { %2116 = shalt.err (!%p2113_p4)
}
  0x52   : > { %s2117_s9 = scalar_lea.vmem %s2503_s23, 512  ;;  %s2331_s10 = smov [#allocation5]  }
  0x53   : > { %p2118_p5 = scmp.ne.s32.totalorder %s2503_s23, %s2117_s9  ;;  %s2122_s16 = sshll.u32 %s2331_s10, 4  ;;  %s2123_s16 = int_to_ptr.vmem [resolvable:$false] %s2122_s16 }
  0x54   : > { %s2124_s3 = scalar_lea.vmem %s2123_s16, 1024  ;;  %p2125_p8 = scmp.lt.s32.totalorder %s2503_s23, %s2123_s16 }
  0x55   : > { %p2120_p11 = pnand %p2118_p5, %p2511_p12  ;;  %p2126_p2 = scmp.lt.s32.totalorder %s2124_s3, %s2117_s9 }
  0x57   : > { %p2121_p13 = pneg %p2120_p11  ;;  %p2127_p3 = por %p2126_p2, %p2125_p8 }
  0x59   : > { %p2128_p7 = pnand %p2127_p3, %p2121_p13 }
  0x5b   : > { %2131 = shalt.err (!%p2128_p7)
}
  0x5c   : > { %s2884_s22 = smov 8   ;;  %s2885_s29 = smov 128  }
  0x5d   : > { %1936 = dma.hbm_to_vmem [thread:$0]  (!%p2491_p6), %s2500_s30, 512, %s2503_s23, %s2505_s11, %s2885_s29, %s2885_s29, %s2884_s22  }
  0x5e   : > { %s2332_s17 = smov [#allocation10]   ;;  %s2132_s9 = scalar_lea.hbm %s2840_s4, 256 }
  0x5f   : > { %s254_s1 = sshll.u32 %s2332_s17, 4  ;;  %p2133_p2 = scmp.ne.s32.totalorder %s2840_s4, %s2132_s9  ;;  %s255_s1 = int_to_ptr.vmem [resolvable:$true] %s254_s1 }
  0x60   : > { %p2886_p8 = scmp.ne.s32.totalorder %s2877_s18, 0  ;;  %p2139_p1 = scmp.lt.u32.totalorder %s2132_s9, %s2840_s4 }
  0x62   : > { %p2887_p0 = pneg %p2886_p8 }
  0x64   : > { %p2135_p9 = pnand %p2133_p2, %p2887_p0 }
  0x66   : > { %p2136_p10 = pneg %p2135_p9 }
  0x68   : > { %p2141_p4 = pnand %p2139_p1, %p2136_p10 }
  0x6a   : > { %2144 = shalt.err (!%p2141_p4)
}
  0x6b   : > { %s2145_s30 = scalar_lea.vmem %s255_s1, 256  ;;  %p2888_p11 = pmov %p2887_p0 }
  0x6c   : > { %p2146_p5 = scmp.ne.s32.totalorder %s255_s1, %s2145_s30  ;;  %p2153_p7 = scmp.lt.s32.totalorder %s255_s1, %s255_s1 }
  0x6d   : > { %p2154_p6 = scmp.lt.s32.totalorder %s2145_s30, %s2145_s30 }
  0x6e   : > { %p2148_p13 = pnand %p2146_p5, %p2888_p11 }
  0x6f   : > { %p2155_p12 = por %p2154_p6, %p2153_p7 }
  0x70   : > { %p2149_p3 = pneg %p2148_p13 }
  0x72   : > { %p2156_p0 = pnand %p2155_p12, %p2149_p3 }
  0x74   : > { %2159 = shalt.err (!%p2156_p0)
}
  0x75   : > { %1929 = dma.hbm_to_vmem [thread:$0]  (!%p2886_p8), %s2840_s4, 256, %s255_s1, [#allocation9], %s2885_s29, %s2885_s29, %s2884_s22  }
  0x76   : > { %s2565_s17 = scalar_lea.hbm %s2836_s0, %s2485_s19  ;;  %s275_s18 = scalar_lea.vmem [#allocation2], %s2457_s20 }
  0x77   : > { %s282_s10 = sshll.u32 %s275_s18, 4  ;;  %s2889_s9 = sand.u32 1, %s2322_s26   ;;  %s2568_s10 = int_to_ptr.vmem [resolvable:$true] %s282_s10 }
  0x78   : > { %s2572_s16 = scalar_lea.sflag [#allocation3], %s2889_s9  ;;  %s2160_s3 = scalar_lea.hbm %s2565_s17, 512 }
  0x79   : > { %p2161_p6 = scmp.ne.s32.totalorder %s2565_s17, %s2160_s3  ;;  %p2890_p12 = scmp.ne.s32.totalorder %s2883_s21, 0 }
  0x7a   : > { %s2165_s24 = scalar_lea.hbm %s2836_s0, 1024  ;;  %p2166_p9 = scmp.lt.u32.totalorder %s2565_s17, %s2836_s0 }
  0x7b   : > { %p2163_p2 = pnand %p2161_p6, %p2890_p12  ;;  %p2167_p10 = scmp.lt.u32.totalorder %s2165_s24, %s2160_s3 }
  0x7c   : > { %p2169_p4 = scmp.lt.u32.totalorder %s2160_s3, %s2565_s17 }
  0x7d   : > { %p2164_p8 = pneg %p2163_p2  ;;  %p2168_p1 = por %p2167_p10, %p2166_p9 }
  0x7f   : > { %p2170_p5 = por %p2169_p4, %p2168_p1 }
  0x81   : > { %p2171_p11 = pnand %p2170_p5, %p2164_p8 }
  0x83   : > { %2174 = shalt.err (!%p2171_p11)
}
  0x84   : > { %s2175_s23 = scalar_lea.vmem %s2568_s10, 512  ;;  %s2333_s18 = smov [#allocation2]  }
  0x85   : > { %p2176_p13 = scmp.ne.s32.totalorder %s2568_s10, %s2175_s23  ;;  %s2180_s9 = sshll.u32 %s2333_s18, 4  ;;  %s2181_s9 = int_to_ptr.vmem [resolvable:$false] %s2180_s9 }
  0x86   : > { %s2182_s1 = scalar_lea.vmem %s2181_s9, 1024  ;;  %p2183_p0 = scmp.lt.s32.totalorder %s2568_s10, %s2181_s9 }
  0x87   : > { %p2178_p3 = pnand %p2176_p13, %p2890_p12  ;;  %p2184_p6 = scmp.lt.s32.totalorder %s2182_s1, %s2175_s23 }
  0x89   : > { %p2179_p7 = pneg %p2178_p3  ;;  %p2185_p2 = por %p2184_p6, %p2183_p0 }
  0x8b   : > { %p2186_p9 = pnand %p2185_p2, %p2179_p7 }
  0x8d   : > { %2189 = shalt.err (!%p2186_p9)
}
  0x8e   : > { %p2891_p8 = scmp.ne.s32.totalorder %s2881_s8, 0  ;;  %s2603_s24 = scalar_lea.hbm %s2838_s2, %s2485_s19 }
  0x8f   : > { %s317_s27 = scalar_lea.vmem [#allocation7], %s2457_s20  ;;  %s2190_s23 = scalar_lea.hbm %s2603_s24, 512 }
  0x90   : > { %1933 = dma.hbm_to_vmem [thread:$0]  (!%p2891_p8), %s2565_s17, 512, %s2568_s10, %s2572_s16, %s2885_s29, %s2885_s29, %s2884_s22  }
  0x91   : > { %s324_s14 = sshll.u32 %s317_s27, 4  ;;  %p2191_p10 = scmp.ne.s32.totalorder %s2603_s24, %s2190_s23  ;;  %s2606_s14 = int_to_ptr.vmem [resolvable:$true] %s324_s14 }
  0x92   : > { %s2195_s10 = scalar_lea.hbm %s2838_s2, 1024  ;;  %p2196_p5 = scmp.lt.u32.totalorder %s2603_s24, %s2838_s2 }
  0x93   : > { %p2193_p1 = pnand %p2191_p10, %p2890_p12  ;;  %p2197_p11 = scmp.lt.u32.totalorder %s2195_s10, %s2190_s23 }
  0x94   : > { %p2199_p3 = scmp.lt.u32.totalorder %s2190_s23, %s2603_s24 }
  0x95   : > { %p2194_p4 = pneg %p2193_p1  ;;  %p2198_p13 = por %p2197_p11, %p2196_p5 }
  0x97   : > { %p2200_p7 = por %p2199_p3, %p2198_p13 }
  0x99   : > { %p2201_p0 = pnand %p2200_p7, %p2194_p4 }
  0x9b   : > { %2204 = shalt.err (!%p2201_p0)
}
  0x9c   : > { %s2205_s20 = scalar_lea.vmem %s2606_s14, 512  ;;  %s2334_s9 = smov [#allocation7]  }
  0x9d   : > { %p2206_p6 = scmp.ne.s32.totalorder %s2606_s14, %s2205_s20  ;;  %s2210_s1 = sshll.u32 %s2334_s9, 4  ;;  %s2211_s1 = int_to_ptr.vmem [resolvable:$false] %s2210_s1 }
  0x9e   : > { %s2212_s3 = scalar_lea.vmem %s2211_s1, 1024  ;;  %p2213_p10 = scmp.lt.s32.totalorder %s2606_s14, %s2211_s1 }
  0x9f   : > { %p2208_p2 = pnand %p2206_p6, %p2890_p12  ;;  %p2214_p1 = scmp.lt.s32.totalorder %s2212_s3, %s2205_s20 }
  0xa1   : > { %p2209_p9 = pneg %p2208_p2  ;;  %p2215_p5 = por %p2214_p1, %p2213_p10 }
  0xa3   : > { %p2216_p11 = pnand %p2215_p5, %p2209_p9 }
  0xa5   : > { %2219 = shalt.err (!%p2216_p11)
}
  0xa6   : > { %1939 = dma.hbm_to_vmem [thread:$0]  (!%p2891_p8), %s2603_s24, 512, %s2606_s14, %s2505_s11, %s2885_s29, %s2885_s29, %s2884_s22  }
  0xa7   : > { %p2892_p12 = scmp.ne.s32.totalorder %s2876_s15, 0 }
  0xa8   : > { %s2636_s21 = sand.u32 (!%p2892_p12), 1, %s2318_s25   ;;  %p2893_p4 = scmp.ne.s32.totalorder (!%p2892_p12), %s2872_s12, 0 }
  0xa9   : > { %336 = sbr.rel (%p2892_p12) target bundleno = 1655 (0x677), region = 44  ;;  %s1756_s30 = sshll.u32 (!%p2892_p12), %s2636_s21, 5 }
  0xaa   : > { %s339_s27 = scalar_lea.sflag (!%p2892_p12), [#allocation3], %s2636_s21  ;;  %s2640_s23 = scalar_lea.vmem (!%p2892_p12), [#allocation2], %s1756_s30 }
  0xb0   : > { %2293 = dma.done.wait (%p2893_p4), %s339_s27, 512  }
  0xb1   : > { %2295 = vsyncadd (%p2893_p4), %s339_s27, 4294966784  ;;  %s347_s8 = sand.u32 1, %s2401_s28   ;;  %s351_s11 = scalar_lea.vmem [#allocation5], %s1756_s30 }
  0xb2   : > { %s348_s15 = scalar_lea.sflag [#allocation6], %s347_s8 }
  0xb3   : > { %2297 = dma.done.wait (%p2893_p4), %s348_s15, 1024  }
  0xb4   : > { %2299 = vsyncadd (%p2893_p4), %s348_s15, 4294966272  ;;  %s2651_s22 = scalar_lea.vmem [#allocation7], %s1756_s30  ;;  %p2894_p8 = scmp.eq.s32.totalorder %s2401_s28, 0 }
  0xb6   : > { %2301 = dma.done.wait (%p2894_p8), [#allocation9], 512   ;;  %p2895_p13 = pmov %p2894_p8 }
  0xb7   : > { %vm430_vm0 = vcmask 130048   ;;  %v419_v0 = vld [vmem:[#allocation10] sm:$0xff]  ;;  %v420_v1 = vld [vmem:[#allocation10 + $0x8] sm:$0xff]  ;;  %v417_v2 = vld [vmem:[#allocation8] sm:$0xff]  ;;  %v2335_v14 = vmov 0.0   ;;  %vm2336_vm1 = vmmov 0  }
  0xb8   : > { %2303 = vsyncadd (%p2895_p13), [#allocation9], 4294966784  ;;  %v1901_v3 = vpack.c.bf16 %v420_v1, %v419_v0  ;;  %v418_v4 = vld [vmem:[#allocation8 + $0x8] sm:$0xff]  ;;  %v426_v5 = vld [vmem:[%s351_s11] sm:$0xff]  ;;  %vm679_vm2 = vcmask 261120   ;;  %vm1008_vm3 = vcmask 64512  }
  0xb9   : > { %v1897_v6 = vpack.c.bf16 %v418_v4, %v417_v2  ;;  %1851 = vmatprep.mubr.msk.f32.mxu1 %vm430_vm0, %v426_v5  ;;  %v422_v7 = vld [vmem:[%s2640_s23] sm:$0xff]  ;;  %v427_v8 = vld [vmem:[%s351_s11 + $0x8] sm:$0xff]  ;;  %v428_v10 = vld [vmem:[%s351_s11 + $0x10] sm:$0xff]  ;;  %vm1091_vm4 = vcmask 1041409   ;;  %vm1093_vm5 = vcmask 1042434   ;;  %vm1095_vm6 = vcmask 1043459  }
  0xba   : > { %1902 = vmatprep.subr.bf16.mxu1 %v1901_v3  ;;  %1841 = vmatprep.mubr.msk.f32.mxu0 %vm430_vm0, %v422_v7  ;;  %v423_v9 = vld [vmem:[%s2640_s23 + $0x8] sm:$0xff]  ;;  %v424_v11 = vld [vmem:[%s2640_s23 + $0x10] sm:$0xff]  ;;  %v429_v12 = vld [vmem:[%s351_s11 + $0x18] sm:$0xff]  ;;  %vm1098_vm7 = vcmask 60416   ;;  %s1761_s24 = sshll.u32 %s2636_s21, 2  ;;  %s1802_s18 = sshll.u32 %s2401_s28, 6 }
  0xbb   : > { %1904 = vmatpush3.bf16.msra.mxu1 %v1901_v3  ;;  %1898 = vmatprep.subr.bf16.mxu0 %v1897_v6  ;;  %v425_v13 = vld [vmem:[%s2640_s23 + $0x18] sm:$0xff]  ;;  %v1771_v15 = vld [vmem:[%s2841_s5] ss:$0 sm:$0xff]  ;;  %s413_s14 = scalar_lea.vmem [#allocation12], %s1761_s24  ;;  %s2762_s16 = scalar_lea.hbm %s2843_s7, %s1802_s18 }
  0xbc   : > { %1900 = vmatpush3.bf16.msra.mxu0 %v1897_v6  ;;  %1862 = vmatprep.subr.mxu1 %v2335_v14  ;;  %s1577_s19 = sshll.u32 %s413_s14, 4  ;;  %s1551_s20 = scalar_lea.sflag [#allocation13], %s2636_s21  ;;  %s1578_s19 = int_to_ptr.vmem [resolvable:$true] %s1577_s19 }
  0xbd   : > { %1857 = vmatprep.subr.mxu0 %v2335_v14  ;;  %s2220_s9 = scalar_lea.vmem %s1578_s19, 64  ;;  %p2896_p7 = scmp.ne.s32.totalorder %s2873_s13, 0 }
  0xbe   : > { %1852 = vmatmul.mubr.msk.f32.vlgmr.msra.gmra.mrb[0].mxu1 %vm430_vm0, %v427_v8  ;;  %p2221_p3 = scmp.ne.s32.totalorder %s1578_s19, %s2220_s9  ;;  %s2338_s1 = smov [#allocation12]  }
  0xbf   : > { %1842 = vmatmul.mubr.msk.f32.vlgmr.msra.gmra.mrb[0].mxu0 %vm430_vm0, %v423_v9  ;;  %1854 = vmatprep.mubr.msk.f32.mxu1 %vm430_vm0, %v428_v10  ;;  %s2224_s3 = sshll.u32 %s2338_s1, 4  ;;  %s2225_s3 = int_to_ptr.vmem [resolvable:$false] %s2224_s3 }
  0xc0   : > { %1844 = vmatprep.mubr.msk.f32.mxu0 %vm430_vm0, %v424_v11  ;;  %p2222_p0 = pnand %p2221_p3, %p2896_p7  ;;  %s2226_s30 = scalar_lea.vmem %s2225_s3, 128 }
  0xc1   : > { %p2227_p2 = scmp.lt.s32.totalorder %s1578_s19, %s2225_s3  ;;  %p2228_p9 = scmp.lt.s32.totalorder %s2226_s30, %s2220_s9 }
  0xc2   : > { %1855 = vmatmul.mubr.msk.f32.gmra.mrb[2].mxu1 %vm430_vm0, %v429_v12  ;;  %p2223_p6 = pneg %p2222_p0 }
  0xc3   : > { %1845 = vmatmul.mubr.msk.f32.gmra.mrb[2].mxu0 %vm430_vm0, %v425_v13  ;;  %1864 = vmatprep.mubr.msk.f32.mxu1 %vm2336_vm1, %v2335_v14  ;;  %p2229_p10 = por %p2228_p9, %p2227_p2 }
  0xc4   : > { %1859 = vmatprep.mubr.msk.f32.mxu0 %vm2336_vm1, %v2335_v14 }
  0xc5   : > { %p2230_p1 = pnand %p2229_p10, %p2223_p6 }
 0x191   : > { %v1853_v16 = vpop.f32.mrb[0].mxu1 }
 0x192   : > { %v642_v17 = vadd.f32 %v1853_v16, %v1771_v15  ;;  %v636_v18 = vpop.f32.mrb[1].mxu1  ;;  %v1843_v19 = vpop.f32.mrb[0].mxu0 }
 0x193   : > { %v637_v20 = vadd.f32 %v1771_v15, %v636_v18  ;;  %v1768_v21 = vmul.f32 -1.442695, %v1843_v19  ;;  %v509_v22 = vpop.f32.mrb[1].mxu0 }
 0x194   : > { %v1777_v23 = vmul.f32 -1.442695, %v642_v17  ;;  %v1767_v24 = vmul.f32 -1.442695, %v509_v22 }
 0x195   : > { %v1776_v25 = vmul.f32 -1.442695, %v637_v20  ;;  %1994 = vpow2.f32 %v1768_v21  ;;  %v1856_v26 = vpop.f32.mrb[2].mxu1 }
 0x196   : > { %1996 = vpow2.f32 %v1777_v23  ;;  %v652_v27 = vadd.f32 %v1856_v26, %v1771_v15  ;;  %v646_v28 = vpop.f32.mrb[3].mxu1  ;;  %v1846_v29 = vpop.f32.mrb[2].mxu0 }
 0x197   : > { %1998 = vpow2.f32 %v1776_v25  ;;  %v647_v30 = vadd.f32 %v1771_v15, %v646_v28  ;;  %v1770_v31 = vmul.f32 -1.442695, %v1846_v29  ;;  %v519_v32 = vpop.f32.mrb[3].mxu0 }
 0x198   : > { %2000 = vpow2.f32 %v1767_v24  ;;  %v1779_v33 = vmul.f32 -1.442695, %v652_v27  ;;  %v1769_v34 = vmul.f32 -1.442695, %v519_v32 }
 0x199   : > { %v1778_v35 = vmul.f32 -1.442695, %v647_v30  ;;  %2002 = vpow2.f32 %v1770_v31 }
 0x19a   : > { %2004 = vpow2.f32 %v1779_v33 }
 0x19b   : > { %2006 = vpow2.f32 %v1778_v35 }
 0x19c   : > { %2008 = vpow2.f32 %v1769_v34 }
 0x19f   : > { %v1995_v36 = vpop.eup %1994 }
 0x1a0   : > { %v1997_v37 = vpop.eup %1996  ;;  %v541_v38 = vadd.f32 1.0, %v1995_v36 }
 0x1a1   : > { %v1999_v39 = vpop.eup %1998  ;;  %v668_v40 = vadd.f32 1.0, %v1997_v37 }
 0x1a2   : > { %v2001_v41 = vpop.eup %2000  ;;  %v667_v42 = vadd.f32 1.0, %v1999_v39  ;;  %2010 = vrcp.f32 %v541_v38 }
 0x1a3   : > { %v2003_v43 = vpop.eup %2002  ;;  %2012 = vrcp.f32 %v668_v40  ;;  %v540_v44 = vadd.f32 1.0, %v2001_v41 }
 0x1a4   : > { %v2005_v45 = vpop.eup %2004  ;;  %2014 = vrcp.f32 %v667_v42  ;;  %v543_v46 = vadd.f32 1.0, %v2003_v43 }
 0x1a5   : > { %v2007_v47 = vpop.eup %2006  ;;  %2016 = vrcp.f32 %v540_v44  ;;  %v670_v48 = vadd.f32 1.0, %v2005_v45 }
 0x1a6   : > { %v2009_v49 = vpop.eup %2008  ;;  %v669_v50 = vadd.f32 1.0, %v2007_v47  ;;  %2018 = vrcp.f32 %v543_v46 }
 0x1a7   : > { %2020 = vrcp.f32 %v670_v48  ;;  %v542_v51 = vadd.f32 1.0, %v2009_v49  ;;  %v1073_v49 = vlaneseq }
 0x1a8   : > { %2022 = vrcp.f32 %v669_v50 }
 0x1a9   : > { %2024 = vrcp.f32 %v542_v51  ;;  %v1074_v50 = vand.u32 127, %v1073_v49  ;;  %v2706_v51 = vshrl.u32 %v1073_v49, 7 }
 0x1ac   : > { %v2011_v52 = vpop.eup %2010 }
 0x1ad   : > { %v2013_v53 = vpop.eup %2012 }
 0x1ae   : > { %v2015_v54 = vpop.eup %2014  ;;  %1863 = vmatpush3.xpose.msk.msra.mxu1 %vm679_vm2, %v2013_v53  ;;  %v1022_v55 = vmul.f32 %v2013_v53, %v2011_v52 }
 0x1af   : > { %v2017_v56 = vpop.eup %2016  ;;  %1858 = vmatpush3.xpose.msk.msra.mxu0 %vm679_vm2, %v2015_v54  ;;  %1872 = vmatprep.subr.mxu1 %v2335_v14 }
 0x1b0   : > { %v2019_v57 = vpop.eup %2018  ;;  %1867 = vmatprep.subr.mxu0 %v2335_v14  ;;  %v1021_v58 = vmul.f32 %v2017_v56, %v2015_v54  ;;  %v1028_v1 = vsel %vm679_vm2, %v1022_v55, 0.0 }
 0x1b1   : > { %v2021_v59 = vpop.eup %2020  ;;  %1865 = vmatmul.mubr.msk.f32.vlgmr.msra.gmra.mrb[4].mxu1 %vm679_vm2, %v2011_v52 }
 0x1b2   : > { %v2023_v60 = vpop.eup %2022  ;;  %1873 = vmatpush3.xpose.msk.msra.mxu1 %vm679_vm2, %v2021_v59  ;;  %v1025_v61 = vsel %vm679_vm2, %v1021_v58, 0.0  ;;  %1860 = vmatmul.mubr.msk.f32.vlgmr.msra.gmra.mrb[4].mxu0 %vm679_vm2, %v2017_v56  ;;  %v1024_v62 = vmul.f32 %v2021_v59, %v2019_v57  ;;  %v2709_v58 = vsub.s32 %v1074_v50, %v2706_v51 }
 0x1b3   : > { %v2025_v63 = vpop.eup %2024  ;;  %1026 = vadd.xlane.f32.xlu0 %v1025_v61  ;;  %1868 = vmatpush3.xpose.msk.msra.mxu0 %vm679_vm2, %v2023_v60 }
 0x1b4   : > { %1874 = vmatprep.mubr.msk.f32.mxu1 %vm2336_vm1, %v2335_v14  ;;  %1869 = vmatprep.mubr.msk.f32.mxu0 %vm2336_vm1, %v2335_v14  ;;  %v1023_v0 = vmul.f32 %v2025_v63, %v2023_v60  ;;  %v1034_v3 = vsel %vm679_vm2, %v1024_v62, 0.0 }
 0x1b5   : > { %1875 = vmatmul.mubr.msk.f32.vlgmr.msra.gmra.mrb[6].mxu1 %vm679_vm2, %v2019_v57  ;;  %1877 = vmatprep.subr.mxu0 %v2335_v14 }
 0x1b6   : > { %v1031_v2 = vsel %vm679_vm2, %v1023_v0, 0.0  ;;  %1870 = vmatmul.mubr.msk.f32.vlgmr.msra.gmra.mrb[6].mxu0 %vm679_vm2, %v2025_v63  ;;  %1882 = vmatprep.subr.mxu1 %v2335_v14 }
 0x1b7   : > { %1029 = vadd.xlane.f32.xlu0 %v1028_v1  ;;  %1032 = vadd.xlane.f32.xlu1 %v1031_v2 }
 0x1b8   : > { %1879 = vmatprep.mubr.msk.f32.mxu0 %vm2336_vm1, %v2335_v14  ;;  %1884 = vmatprep.mubr.msk.f32.mxu1 %vm2336_vm1, %v2335_v14 }
 0x1bb   : > { %1035 = vadd.xlane.f32.xlu1 %v1034_v3 }
 0x240   : > { %v1027_v33 = vpop.xlane.xlu0 %1026 }
 0x241   : > { %v1792_v37 = vmul.f32 -1.442695, %v1027_v33 }
 0x244   : > { %v1033_v34 = vpop.xlane.xlu1 %1032  ;;  %v1030_v35 = vpop.xlane.xlu0 %1029 }
 0x245   : > { %v1793_v36 = vmul.f32 -1.442695, %v1030_v35  ;;  %v1794_v40 = vmul.f32 -1.442695, %v1033_v34 }
 0x248   : > { %v1036_v38 = vpop.xlane.xlu1 %1035 }
 0x249   : > { %v1795_v39 = vmul.f32 -1.442695, %v1036_v38 }
 0x284   : > { %v828_v4 = vpop.f32.mrb[4].mxu1 }
 0x285   : > { %v1789_v5 = vmul.f32 -1.442695, %v828_v4  ;;  %v752_v6 = vpop.f32.mrb[4].mxu0  ;;  %v1866_v7 = vpop.f32.mrb[5].mxu1 }
 0x286   : > { %v1788_v8 = vmul.f32 -1.442695, %v752_v6  ;;  %v1861_v9 = vpop.f32.mrb[5].mxu0 }
 0x287   : > { %2026 = vpow2.f32 %v1789_v5 }
 0x288   : > { %2028 = vpow2.f32 %v1788_v8  ;;  %v980_v10 = vpop.f32.mrb[6].mxu1 }
 0x289   : > { %v1791_v11 = vmul.f32 -1.442695, %v980_v10  ;;  %v904_v12 = vpop.f32.mrb[6].mxu0  ;;  %v1876_v13 = vpop.f32.mrb[7].mxu1 }
 0x28a   : > { %v1790_v15 = vmul.f32 -1.442695, %v904_v12  ;;  %v1871_v16 = vpop.f32.mrb[7].mxu0  ;;  %v2337_v13 = vmov 0  }
 0x28b   : > { %2030 = vpow2.f32 %v1791_v11  ;;  %1993 = vset.pattern.permute.xlu0 %v2337_v13  ;;  %1992 = vset.pattern.permute.xlu1 %v2337_v13  ;;  %v1109_v16 = vsub.s32 1, %v2706_v51 }
 0x28c   : > { %2032 = vpow2.f32 %v1790_v15  ;;  %v1105_v15 = vsub.s32 0, %v2706_v51 }
 0x291   : > { %v2027_v17 = vpop.eup %2026 }
 0x292   : > { %v2029_v18 = vpop.eup %2028  ;;  %v997_v19 = vadd.f32 1.0, %v2027_v17  ;;  %v1113_v17 = vsub.s32 2, %v2706_v51 }
 0x293   : > { %v996_v20 = vadd.f32 1.0, %v2029_v18  ;;  %v1117_v18 = vsub.s32 3, %v2706_v51 }
 0x294   : > { %2034 = vrcp.f32 %v997_v19 }
 0x295   : > { %v2031_v21 = vpop.eup %2030  ;;  %2036 = vrcp.f32 %v996_v20 }
 0x296   : > { %v2033_v22 = vpop.eup %2032  ;;  %v999_v23 = vadd.f32 1.0, %v2031_v21 }
 0x297   : > { %v998_v24 = vadd.f32 1.0, %v2033_v22 }
 0x298   : > { %2038 = vrcp.f32 %v999_v23 }
 0x299   : > { %2040 = vrcp.f32 %v998_v24 }
 0x29a   : > { %2042 = vpow2.f32 %v1793_v36 }
 0x29b   : > { %2044 = vpow2.f32 %v1792_v37 }
 0x29c   : > { %2046 = vpow2.f32 %v1795_v39 }
 0x29d   : > { %2048 = vpow2.f32 %v1794_v40 }
 0x29e   : > { %v2035_v25 = vpop.eup %2034 }
 0x29f   : > { %v2037_v26 = vpop.eup %2036  ;;  %v1012_v27 = vsel %vm1008_vm3, %v2035_v25, 0.0 }
 0x2a0   : > { %1013 = vadd.xlane.f32.xlu1 %v1012_v27  ;;  %v1009_v28 = vsel %vm1008_vm3, %v2037_v26, 0.0 }
 0x2a1   : > { %1010 = vadd.xlane.f32.xlu0 %v1009_v28 }
 0x2a2   : > { %v2039_v29 = vpop.eup %2038 }
 0x2a3   : > { %v2041_v30 = vpop.eup %2040  ;;  %v1018_v31 = vsel %vm1008_vm3, %v2039_v29, 0.0 }
 0x2a4   : > { %1019 = vadd.xlane.f32.xlu1 %v1018_v31  ;;  %v1015_v32 = vsel %vm1008_vm3, %v2041_v30, 0.0  ;;  %v2043_v41 = vpop.eup %2042 }
 0x2a5   : > { %1016 = vadd.xlane.f32.xlu0 %v1015_v32  ;;  %v2045_v42 = vpop.eup %2044  ;;  %v1050_v43 = vadd.f32 1.0, %v2043_v41 }
 0x2a6   : > { %v2047_v44 = vpop.eup %2046  ;;  %v1049_v45 = vadd.f32 1.0, %v2045_v42 }
 0x2a7   : > { %v2049_v46 = vpop.eup %2048  ;;  %2050 = vrcp.f32 %v1050_v43  ;;  %v1052_v47 = vadd.f32 1.0, %v2047_v44 }
 0x2a8   : > { %2052 = vrcp.f32 %v1049_v45  ;;  %v1051_v48 = vadd.f32 1.0, %v2049_v46 }
 0x2a9   : > { %2054 = vrcp.f32 %v1052_v47 }
 0x2aa   : > { %2056 = vrcp.f32 %v1051_v48 }
 0x2b1   : > { %v2051_v52 = vpop.eup %2050 }
 0x2b2   : > { %v2053_v54 = vpop.eup %2052 }
 0x2b3   : > { %v2055_v60 = vpop.eup %2054 }
 0x2b4   : > { %v2057_v63 = vpop.eup %2056 }
 0x32d   : > { %v1014_v53 = vpop.xlane.xlu1 %1013 }
 0x32e   : > { %v1062_v55 = vsub.f32 %v1014_v53, %v2051_v52  ;;  %v1011_v56 = vpop.xlane.xlu0 %1010 }
 0x32f   : > { %v1061_v57 = vsub.f32 %v1011_v56, %v2053_v54  ;;  %v1203_v56 = vld [vmem:[%s2651_s22] sm:$0xff] }
 0x330   : > { %v1066_v59 = vmul.f32 0.03125, %v1062_v55  ;;  %1878 = vmatpush3.msra.mxu0 %v1203_v56 }
 0x331   : > { %v1065_v61 = vmul.f32 0.03125, %v1061_v57  ;;  %v1020_v62 = vpop.xlane.xlu1 %1019  ;;  %1887 = vmatprep.subr.mxu0 %v2335_v14 }
 0x332   : > { %v1064_v0 = vsub.f32 %v1020_v62, %v2055_v60  ;;  %v1017_v1 = vpop.xlane.xlu0 %1016  ;;  %v1082_v3 = vrot.slane %v1066_v59, %v2709_v58 }
 0x333   : > { %v1063_v2 = vsub.f32 %v1017_v1, %v2057_v63  ;;  %v1078_v4 = vrot.slane %v1065_v61, %v2709_v58 }
 0x334   : > { %v1068_v5 = vmul.f32 0.03125, %v1064_v0 }
 0x335   : > { %v1067_v6 = vmul.f32 0.03125, %v1063_v2  ;;  %v1092_v9 = vsel %vm1091_vm4, %v1082_v3, %v1078_v4  ;;  %v1205_v2 = vld [vmem:[%s2651_s22 + $0x10] sm:$0xff] }
 0x336   : > { %v1090_v8 = vrot.slane %v1068_v5, %v2709_v58 }
 0x337   : > { %v1086_v7 = vrot.slane %v1067_v6, %v2709_v58 }
 0x339   : > { %v1094_v10 = vsel %vm1093_vm5, %v1086_v7, %v1092_v9 }
 0x33a   : > { %v1096_v11 = vsel %vm1095_vm6, %v1090_v8, %v1094_v10 }
 0x33b   : > { %v1099_v12 = vsel %vm1098_vm7, %v1096_v11, -inf }
 0x33c   : > { %1100 = vmax.xlane.f32.xlu0 %v1099_v12 }
 0x3c9   : > { %v1101_v19 = vpop.xlane.xlu0 %1100 }
 0x3ca   : > { %v1106_v20 = vrot.slane %v1101_v19, %v1105_v15  ;;  %v1110_v21 = vrot.slane %v1101_v19, %v1109_v16  ;;  %v1114_v22 = vrot.slane %v1101_v19, %v1113_v17  ;;  %v1118_v23 = vrot.slane %v1101_v19, %v1117_v18 }
 0x3cc   : > { %v1123_v24 = vsub.f32 %v1065_v61, %v1106_v20  ;;  %v1124_v25 = vsub.f32 %v1066_v59, %v1110_v21  ;;  %v1125_v26 = vsub.f32 %v1067_v6, %v1114_v22  ;;  %v1126_v29 = vsub.f32 %v1068_v5, %v1118_v23  ;;  %v1204_v61 = vld [vmem:[%s2651_s22 + $0x8] sm:$0xff]  ;;  %v1206_v5 = vld [vmem:[%s2651_s22 + $0x18] sm:$0xff] }
 0x3cd   : > { %1883 = vmatpush3.msra.mxu1 %v1204_v61 }
 0x3ce   : > { %v1127_v27 = vmul.f32 1.442695, %v1123_v24  ;;  %v1129_v28 = vmul.f32 1.442695, %v1124_v25  ;;  %v1131_v30 = vmul.f32 1.442695, %v1125_v26  ;;  %1892 = vmatprep.subr.mxu1 %v2335_v14 }
 0x3cf   : > { %v1133_v31 = vmul.f32 1.442695, %v1126_v29 }
 0x3d0   : > { %2058 = vpow2.f32 %v1127_v27 }
 0x3d1   : > { %2060 = vpow2.f32 %v1129_v28 }
 0x3d2   : > { %2062 = vpow2.f32 %v1131_v30 }
 0x3d3   : > { %2064 = vpow2.f32 %v1133_v31 }
 0x3da   : > { %v2059_v32 = vpop.eup %2058 }
 0x3db   : > { %v2061_v33 = vpop.eup %2060  ;;  %1140 = vperm.xlu1 %1992, %v2059_v32  }
 0x3dc   : > { %1143 = vperm.xlu0 %1993, %v2061_v33   ;;  %v2063_v34 = vpop.eup %2062 }
 0x3dd   : > { %v2065_v35 = vpop.eup %2064 }
 0x3df   : > { %1146 = vperm.xlu1 %1992, %v2063_v34  }
 0x3e3   : > { %1149 = vperm.xlu1 %1992, %v2065_v35  }
 0x45a   : > { %v1141_v36 = vpop.permute.xlu1 %1140 }
 0x45b   : > { %v1144_v37 = vpop.permute.xlu0 %1143  ;;  %v1154_v40 = vrot.slane %v1141_v36, %v2709_v58 }
 0x45c   : > { %v1158_v39 = vrot.slane %v1144_v37, %v2709_v58 }
 0x45e   : > { %v1147_v38 = vpop.permute.xlu1 %1146  ;;  %v1167_v43 = vsel %vm1091_vm4, %v1158_v39, %v1154_v40 }
 0x45f   : > { %v1162_v41 = vrot.slane %v1147_v38, %v2709_v58 }
 0x461   : > { %v1168_v45 = vsel %vm1093_vm5, %v1162_v41, %v1167_v43 }
 0x462   : > { %v1150_v42 = vpop.permute.xlu1 %1149 }
 0x463   : > { %v1166_v44 = vrot.slane %v1150_v42, %v2709_v58 }
 0x465   : > { %v1169_v46 = vsel %vm1095_vm6, %v1166_v44, %v1168_v45 }
 0x466   : > { %v1171_v47 = vsel %vm1098_vm7, %v1169_v46, 0.0 }
 0x467   : > { %1172 = vadd.xlane.f32.xlu1 %v1171_v47 }
 0x4f4   : > { %v1173_v48 = vpop.xlane.xlu1 %1172 }
 0x4f5   : > { %v1178_v49 = vrot.slane %v1173_v48, %v1105_v15  ;;  %v1182_v50 = vrot.slane %v1173_v48, %v1109_v16  ;;  %v1186_v51 = vrot.slane %v1173_v48, %v1113_v17  ;;  %v1190_v52 = vrot.slane %v1173_v48, %v1117_v18 }
 0x4f7   : > { %2066 = vrcp.f32 %v1178_v49 }
 0x4f8   : > { %2068 = vrcp.f32 %v1182_v50 }
 0x4f9   : > { %2070 = vrcp.f32 %v1186_v51 }
 0x4fa   : > { %2072 = vrcp.f32 %v1190_v52 }
 0x501   : > { %v2067_v53 = vpop.eup %2066 }
 0x502   : > { %v1196_v54 = vmul.f32 %v2067_v53, %v2059_v32  ;;  %v2069_v55 = vpop.eup %2068 }
 0x503   : > { %v1198_v57 = vmul.f32 %v2069_v55, %v2061_v33  ;;  %v2071_v59 = vpop.eup %2070 }
 0x504   : > { %1209 = vperm.xlu0 %1993, %v1196_v54   ;;  %v1200_v60 = vmul.f32 %v2071_v59, %v2063_v34  ;;  %v2073_v62 = vpop.eup %2072 }
 0x505   : > { %v1202_v63 = vmul.f32 %v2073_v62, %v2065_v35 }
 0x508   : > { %1289 = vperm.xlu0 %1993, %v1198_v57  }
 0x50c   : > { %1369 = vperm.xlu0 %1993, %v1200_v60  }
 0x510   : > { %1449 = vperm.xlu0 %1993, %v1202_v63  }
 0x583   : > { %v1210_v0 = vpop.permute.xlu0 %1209 }
 0x584   : > { %v1214_v1 = vrot.slane %v1210_v0, %v2709_v58 }
 0x586   : > { %1880 = vmatmul.mubr.msk.f32.vlgmr.msra.gmra.mrb[8].mxu0 %vm1008_vm3, %v1214_v1 }
 0x587   : > { %v1290_v3 = vpop.permute.xlu0 %1289  ;;  %1888 = vmatpush3.msra.mxu0 %v1205_v2  ;;  %1889 = vmatprep.mubr.msk.f32.mxu0 %vm2336_vm1, %v2335_v14 }
 0x588   : > { %v1294_v4 = vrot.slane %v1290_v3, %v2709_v58 }
 0x58a   : > { %1885 = vmatmul.mubr.msk.f32.vlgmr.msra.gmra.mrb[8].mxu1 %vm1008_vm3, %v1294_v4  ;;  %v1540_v9 = vsel %vm1091_vm4, %v1294_v4, %v1214_v1 }
 0x58b   : > { %v1370_v6 = vpop.permute.xlu0 %1369  ;;  %1893 = vmatpush3.msra.mxu1 %v1206_v5  ;;  %1894 = vmatprep.mubr.msk.f32.mxu1 %vm2336_vm1, %v2335_v14 }
 0x58c   : > { %v1374_v7 = vrot.slane %v1370_v6, %v2709_v58 }
 0x58e   : > { %1890 = vmatmul.mubr.msk.f32.vlgmr.msra.gmra.mrb[10].mxu0 %vm1008_vm3, %v1374_v7  ;;  %v1541_v11 = vsel %vm1093_vm5, %v1374_v7, %v1540_v9 }
 0x58f   : > { %v1450_v8 = vpop.permute.xlu0 %1449 }
 0x590   : > { %v1454_v10 = vrot.slane %v1450_v8, %v2709_v58 }
 0x592   : > { %v1542_v12 = vsel %vm1095_vm6, %v1454_v10, %v1541_v11  ;;  %1895 = vmatmul.mubr.msk.f32.vlgmr.msra.gmra.mrb[10].mxu1 %vm1008_vm3, %v1454_v10 }
 0x593   : > { %1544 = vst.msk [vmem:[%s413_s14] sm:$0xf] %vm1098_vm7, %v1542_v12 }
 0x594   : > { %2233 = shalt.err (!%p2230_p1)
}
 0x595   : > { %s2234_s27 = scalar_lea.hbm %s2762_s16, 64  ;;  %s2238_s15 = scalar_lea.hbm %s2843_s7, 128 }
 0x596   : > { %p2235_p5 = scmp.ne.s32.totalorder %s2762_s16, %s2234_s27  ;;  %p2239_p4 = scmp.lt.u32.totalorder %s2762_s16, %s2843_s7 }
 0x597   : > { %p2240_p8 = scmp.lt.u32.totalorder %s2238_s15, %s2234_s27  ;;  %p2242_p3 = scmp.lt.u32.totalorder %s2234_s27, %s2762_s16 }
 0x598   : > { %p2236_p11 = pnand %p2235_p5, %p2896_p7 }
 0x599   : > { %p2241_p13 = por %p2240_p8, %p2239_p4 }
 0x59a   : > { %p2237_p12 = pneg %p2236_p11 }
 0x59b   : > { %p2243_p0 = por %p2242_p3, %p2241_p13 }
 0x59d   : > { %p2244_p6 = pnand %p2243_p0, %p2237_p12 }
 0x59f   : > { %2247 = shalt.err (!%p2244_p6)
}
 0x5a0   : > { %1920 = dma.vmem_to_hbm [thread:$0]  (%p2896_p7), %s1578_s19, 64, %s2762_s16, %s1551_s20   ;;  %vm1538_vm8 = vcmask 257024  }
 0x5a1   : > { %s406_s12 = scalar_lea.vmem [#allocation11], %s1761_s24  ;;  %s2791_s10 = scalar_lea.hbm %s2842_s6, %s1802_s18 }
 0x5a2   : > { %s1564_s29 = sshll.u32 %s406_s12, 4  ;;  %s1546_s24 = scalar_lea.sflag [#allocation4], %s2636_s21  ;;  %s2793_s29 = int_to_ptr.vmem [resolvable:$true] %s1564_s29 }
 0x5a3   : > { %s2248_s16 = scalar_lea.vmem %s2793_s29, 64  ;;  %s2339_s28 = smov [#allocation11]  }
 0x5a4   : > { %p2249_p2 = scmp.ne.s32.totalorder %s2793_s29, %s2248_s16  ;;  %s2252_s19 = sshll.u32 %s2339_s28, 4  ;;  %s2253_s19 = int_to_ptr.vmem [resolvable:$false] %s2252_s19 }
 0x5a5   : > { %s2254_s20 = scalar_lea.vmem %s2253_s19, 128  ;;  %p2255_p1 = scmp.lt.s32.totalorder %s2793_s29, %s2253_s19 }
 0x5a6   : > { %p2250_p9 = pnand %p2249_p2, %p2896_p7  ;;  %p2256_p5 = scmp.lt.s32.totalorder %s2254_s20, %s2248_s16 }
 0x5a8   : > { %p2251_p10 = pneg %p2250_p9  ;;  %p2257_p11 = por %p2256_p5, %p2255_p1 }
 0x5aa   : > { %p2258_p12 = pnand %p2257_p11, %p2251_p10 }
 0x659   : > { %v1283_v14 = vpop.f32.mrb[8].mxu0 }
 0x65a   : > { %v1881_v58 = vpop.f32.mrb[9].mxu0 }
 0x65d   : > { %v1363_v13 = vpop.f32.mrb[8].mxu1 }
 0x65e   : > { %v1531_v15 = vrot.slane %v1363_v13, 7  ;;  %v1886_v16 = vpop.f32.mrb[9].mxu1 }
 0x660   : > { %v1532_v17 = vsel %vm1091_vm4, %v1531_v15, %v1283_v14 }
 0x661   : > { %v1443_v18 = vpop.f32.mrb[10].mxu0 }
 0x662   : > { %v1533_v19 = vrot.slane %v1443_v18, 6  ;;  %v1891_v20 = vpop.f32.mrb[11].mxu0 }
 0x664   : > { %v1534_v21 = vsel %vm1093_vm5, %v1533_v19, %v1532_v17 }
 0x665   : > { %v1523_v22 = vpop.f32.mrb[10].mxu1 }
 0x666   : > { %v1535_v23 = vrot.slane %v1523_v22, 5  ;;  %v1896_v24 = vpop.f32.mrb[11].mxu1 }
 0x668   : > { %v1536_v25 = vsel %vm1095_vm6, %v1535_v23, %v1534_v21 }
 0x669   : > { %1539 = vst.msk [vmem:[%s406_s12] sm:$0xf] %vm1538_vm8, %v1536_v25 }
 0x66a   : > { %2261 = shalt.err (!%p2258_p12)
}
 0x66b   : > { %s2262_s21 = scalar_lea.hbm %s2791_s10, 64  ;;  %s2266_s1 = scalar_lea.hbm %s2842_s6, 128 }
 0x66c   : > { %p2263_p4 = scmp.ne.s32.totalorder %s2791_s10, %s2262_s21  ;;  %p2267_p3 = scmp.lt.u32.totalorder %s2791_s10, %s2842_s6 }
 0x66d   : > { %p2268_p0 = scmp.lt.u32.totalorder %s2266_s1, %s2262_s21  ;;  %p2270_p2 = scmp.lt.u32.totalorder %s2262_s21, %s2791_s10 }
 0x66e   : > { %p2264_p8 = pnand %p2263_p4, %p2896_p7 }
 0x66f   : > { %p2269_p6 = por %p2268_p0, %p2267_p3 }
 0x670   : > { %p2265_p13 = pneg %p2264_p8 }
 0x671   : > { %p2271_p9 = por %p2270_p2, %p2269_p6 }
 0x673   : > { %p2272_p10 = pnand %p2271_p9, %p2265_p13 }
 0x675   : > { %2275 = shalt.err (!%p2272_p10)
}
 0x676   : > { %1919 = dma.vmem_to_hbm [thread:$0]  (%p2896_p7), %s2793_s29, 64, %s2791_s10, %s1546_s24  }
 0x677 PF: > { %s2897_s27 = sld [smem:[#allocation19_spill]]  ;;  %s2898_s23 = sld [smem:[#allocation23_spill]] }
 0x678   : > { %s2899_s8 = sld [smem:[#allocation20_spill]] }
 0x67d   : > { %s1589_s15 = sand.u32 1, %s2897_s27   ;;  %p2900_p1 = scmp.ne.s32.totalorder %s2898_s23, 0 }
 0x67e   : > { %p2901_p5 = scmp.ge.s32.totalorder %s2899_s8, 2  ;;  %s1590_s11 = scalar_lea.sflag [#allocation4], %s1589_s15 }
 0x680   : > { %p1941_p11 = pnand %p2901_p5, %p2900_p1 }
 0x682   : > { %2305 = dma.done.wait (!%p1941_p11), %s1590_s11, 64  }
 0x683   : > { %2307 = vsyncadd (!%p1941_p11), %s1590_s11, 4294967232  ;;  %s1599_s22 = scalar_lea.sflag [#allocation13], %s1589_s15 }
 0x684   : > { %2309 = dma.done.wait (!%p1941_p11), %s1599_s22, 64  }
 0x685   : > { %2311 = vsyncadd (!%p1941_p11), %s1599_s22, 4294967232  ;;  %s2902_s27 = sld [smem:[#allocation21_spill]]  ;;  %s2903_s13 = sld [smem:[#allocation22_spill]] }
 0x686   : > { %s2904_s24 = smov %s2318_s25  ;;  %s2905_s25 = smov %s2322_s26 }
 0x68b   : > { %p28_p7 = scmp.ge.s32.totalorder %s2902_s27, 4   ;;  %s2906_s26 = smov %s2903_s13 }
 0x68d   :  { %30 = sbr.rel (!%p28_p7) target bundleno = 13 (0xd), region = 138 }
 0x694   :  { %1604 = vsyncpa [#allocation3], 1 }
 0x695   :  { %1606 = vsyncpa [#allocation3 + $0x1], 1 }
 0x696   :  { %1607 = vsyncpa [#allocation6], 1 }
 0x697   :  { %1609 = vsyncpa [#allocation6 + $0x1], 1 }
 0x698   :  { %1610 = vsyncpa [#allocation9], 1 }
 0x699   :  { %1611 = vsyncpa [#allocation4], 1 }
 0x69a   :  { %1613 = vsyncpa [#allocation4 + $0x1], 1 }
 0x69b   :  { %1614 = vsyncpa [#allocation13], 1 }
 0x69c   :  { %1616 = vsyncpa [#allocation13 + $0x1], 1 }

</bundles_post_ra>
